<compile_context>
chip_gen: v7x
topology: tpu7x:2x2x1
jax: 0.10.0
libtpu: 0.0.40
codegen_flags: <defaults>
</compile_context>

<pallas_src>
import jax
import jax.numpy as jnp
from jax import lax
from jax.experimental import pallas as pl
from jax.experimental.pallas import tpu as pltpu


def _bits_to_uniform_kernel(bits_ref, o_ref):
    # bits_ref: (8, 128) uint32 in VMEM ; o_ref: (8, 128) float32 in VMEM
    bits = bits_ref[...]
    # Uniform [0, 1): put 23 random bits into the mantissa of a float in
    # [1.0, 2.0) and subtract 1.0 (pure VPU bit ops + one bitcast).
    mant = (bits >> jnp.uint32(9)) | jnp.uint32(0x3F800000)
    u = lax.bitcast_convert_type(mant, jnp.float32) - jnp.float32(1.0)
    o_ref[...] = u


_uniform_vreg = pl.pallas_call(
    _bits_to_uniform_kernel,
    out_shape=jax.ShapeDtypeStruct((8, 128), jnp.float32),
    in_specs=[pl.BlockSpec(memory_space=pltpu.MemorySpace.VMEM)],
    out_specs=pl.BlockSpec(memory_space=pltpu.MemorySpace.VMEM),
)


@jax.jit
def model_forward(x1, key):
    """Equivalent of Model(m(a)).forward(x1): uniform rand of shape (1,).

    x1 is accepted for API parity with the PyTorch module but is never read
    (exactly as in the reference forward pass).
    """
    del x1  # semantically unused by the module
    bits = jax.random.bits(key, (8, 128), dtype=jnp.uint32)
    u = _uniform_vreg(bits)          # lane-dense (8, 128) vreg of uniforms
    return u[0, :1]                  # the module only returns one sample


if __name__ == "__main__":
    key = jax.random.PRNGKey(0)
    kx, kr = jax.random.split(key)
    # Same shape as the PyTorch reference input x1 = torch.randn(1, 1, 2)
    x1 = jax.random.normal(kx, (1, 1, 2), dtype=jnp.float32)

    y = model_forward(x1, kr)
    jax.block_until_ready(y)

    assert y.shape == (1,) and y.dtype == jnp.float32
    assert bool(jnp.all((y >= 0.0) & (y < 1.0)))
    print("KERNEL_OK")
</pallas_src>

<mosaic_0001>
module attributes {stable_mosaic.version = 11 : i64} {
  func.func @_bits_to_uniform_kernel(%arg0: memref<8x128xi32, #tpu.memory_space<vmem>>, %arg1: memref<8x128xf32, #tpu.memory_space<vmem>>) attributes {dimension_semantics = [], scalar_prefetch = 0 : i64, scratch_operands = 0 : i64, tpu.core_type = #tpu.core_type<tc>} {
    %c0 = arith.constant 0 : index
    %c0_0 = arith.constant 0 : index
    %0 = vector.load %arg0[%c0, %c0_0] : memref<8x128xi32, #tpu.memory_space<vmem>>, vector<8x128xi32>
    %c9_i32 = arith.constant 9 : i32
    %1 = vector.broadcast %c9_i32 : i32 to vector<8x128xi32>
    %2 = arith.shrui %0, %1 : vector<8x128xi32>
    %c1065353216_i32 = arith.constant 1065353216 : i32
    %3 = vector.broadcast %c1065353216_i32 : i32 to vector<8x128xi32>
    %4 = arith.ori %2, %3 : vector<8x128xi32>
    %5 = tpu.bitcast %4 : vector<8x128xi32> -> vector<8x128xf32>
    %cst = arith.constant 1.000000e+00 : f32
    %6 = vector.broadcast %cst : f32 to vector<8x128xf32>
    %7 = arith.subf %5, %6 : vector<8x128xf32>
    %c0_1 = arith.constant 0 : index
    %c0_2 = arith.constant 0 : index
    %8 = vector.load %arg1[%c0_1, %c0_2] : memref<8x128xf32, #tpu.memory_space<vmem>>, vector<8x128xf32>
    tpu.vector_store %arg1[%c0_1, %c0_2], %7 {strides = array<i32>} : memref<8x128xf32, #tpu.memory_space<vmem>>, vector<8x128xf32>,
    return
  }
}

</mosaic_0001>

<bundles_post_ra>
// kernel: model_forward.1
= control target key start
LH: loop header
LB: loop body
LE: loop exit
PB: predicated region body
PF: predicated region fallthrough
CT: control target
= control target key end

     0   :  { %s35_s0 = inlined_call_operand.vmem [shape: u32[8,128], index: 0, kind: input, shape index: {}]   ;;  %s36_s1 = inlined_call_operand.vmem [shape: f32[8,128], index: 1, kind: output, shape index: {}]  }
   0x1   :  { %v8_v0 = vld [vmem:[%s35_s0] sm:$0xff] }
   0x2   :  { %v9_v1 = vshrl.u32 %v8_v0, 9 }
   0x4   :  { %v10_v2 = vor.u32 1065353216, %v9_v1 }
   0x6   :  { %v18_v3 = vadd.f32 -1.0, %v10_v2 }
   0x8   :  { %13 = vst [vmem:[%s36_s1] sm:$0xff] %v18_v3 }

</bundles_post_ra>
